<compile_context>
chip_gen: v6e
topology: v6e:2x2x1
jax: 0.10.0
libtpu: 0.0.40
codegen_flags: <defaults>
</compile_context>

<pallas_src>
import functools
import math

import jax
import jax.numpy as jnp
from jax.experimental import pallas as pl
from jax.experimental.pallas import tpu as pltpu

_NEG_BIG = -1e30   # large-negative instead of -inf so (-1e30) - (-1e30) == 0 (no NaN)
_SLOPE = 0.01      # torch.nn.LeakyReLU default negative_slope


def _global_pooling_kernel(x_ref, mask_ref,
                           wg_ref, bg_ref, wf_ref, bf_ref, wt_ref, bt_ref,
                           out_ref,
                           m_sc, l_sc, acc_sc):
    """One node-tile step of the fused GlobalAttention pooling + transform."""
    t = pl.program_id(0)

    @pl.when(t == 0)
    def _():
        m_sc[...] = jnp.full_like(m_sc, _NEG_BIG)
        l_sc[...] = jnp.zeros_like(l_sc)
        acc_sc[...] = jnp.zeros_like(acc_sc)

    x_t = x_ref[...]          # [Tn, Dp]   node features (zero-padded rows/cols)
    mask_t = mask_ref[...]    # [B,  Tn]   mask[g, i] = 1 iff node i belongs to graph g

    # Gate logits, produced directly in row form: [1, Dp] . [Tn, Dp]^T -> [1, Tn]
    gate = jnp.einsum("od,nd->on", wg_ref[...], x_t,
                      preferred_element_type=jnp.float32) + bg_ref[...]

    # Per-graph masked scores (dense equivalent of PyG's scatter softmax input).
    s = jnp.where(mask_t > 0.0, gate, _NEG_BIG)                 # [B, Tn]

    # att_feat: Linear + LeakyReLU on this node tile (MXU).
    feat = jnp.dot(x_t, wf_ref[...], preferred_element_type=jnp.float32) + bf_ref[...]
    feat = jnp.where(feat >= 0.0, feat, _SLOPE * feat)          # [Tn, Dp]

    # Online segment softmax + weighted aggregation (flash-style accumulator).
    m_prev = m_sc[...]                                          # [B, 1]
    m_new = jnp.maximum(m_prev, jnp.max(s, axis=-1, keepdims=True))
    corr = jnp.exp(m_prev - m_new)                              # rescale old partials
    p = jnp.exp(s - m_new) * mask_t                             # [B, Tn]
    l_sc[...] = corr * l_sc[...] + jnp.sum(p, axis=-1, keepdims=True)
    acc_sc[...] = corr * acc_sc[...] + jnp.dot(p, feat,
                                               preferred_element_type=jnp.float32)
    m_sc[...] = m_new

    @pl.when(t == pl.num_programs(0) - 1)
    def _():
        l = l_sc[...]
        inv_l = jnp.where(l > 0.0, 1.0 / l, 0.0)   # guard graphs with no nodes
        pooled = acc_sc[...] * inv_l                            # [B, Dp]
        y = jnp.dot(pooled, wt_ref[...], preferred_element_type=jnp.float32) + bt_ref[...]
        out_ref[...] = jnp.where(y >= 0.0, y, _SLOPE * y)


@functools.lru_cache(maxsize=None)
def _build_pooling_call(num_graphs, n_pad, d_pad, tile_n):
    """Build (and cache) the pallas_call for a given padded problem signature."""
    grid = (n_pad // tile_n,)
    return pl.pallas_call(
        _global_pooling_kernel,
        out_shape=jax.ShapeDtypeStruct((num_graphs, d_pad), jnp.float32),
        grid_spec=pltpu.PrefetchScalarGridSpec(
            num_scalar_prefetch=0,
            grid=grid,
            in_specs=[
                pl.BlockSpec((tile_n, d_pad), lambda t: (t, 0)),       # x  (streamed)
                pl.BlockSpec((num_graphs, tile_n), lambda t: (0, t)),  # membership mask
                pl.BlockSpec((1, d_pad), lambda t: (0, 0)),            # Wg (row form)
                pl.BlockSpec((1, 1), lambda t: (0, 0)),                # bg
                pl.BlockSpec((d_pad, d_pad), lambda t: (0, 0)),        # Wf
                pl.BlockSpec((1, d_pad), lambda t: (0, 0)),            # bf
                pl.BlockSpec((d_pad, d_pad), lambda t: (0, 0)),        # Wt
                pl.BlockSpec((1, d_pad), lambda t: (0, 0)),            # bt
            ],
            # output block is constant across the node axis (accumulator pattern).
            out_specs=pl.BlockSpec((num_graphs, d_pad), lambda t: (0, 0)),
            scratch_shapes=[
                pltpu.VMEM((num_graphs, 1), jnp.float32),      # running max  m
                pltpu.VMEM((num_graphs, 1), jnp.float32),      # running sum  l
                pltpu.VMEM((num_graphs, d_pad), jnp.float32),  # running pooled acc
            ],
        ),
        compiler_params=pltpu.CompilerParams(
            # node axis is a reduction into the resident output block
            dimension_semantics=("arbitrary",),
        ),
    )


def _round_up(v, m):
    return (v + m - 1) // m * m


@functools.partial(jax.jit, static_argnames=("num_graphs", "tile_n"))
def global_pooling_forward(x, batch_ind, params, *, num_graphs, tile_n=128):
    """x: [N, D] node features, batch_ind: [N] graph id per node -> [B, D]."""
    n, d = x.shape
    d_pad = _round_up(d, 128)      # lane-dense feature dim
    n_pad = _round_up(n, tile_n)   # node axis padded to the tile size
    b = num_graphs
    f32 = jnp.float32

    # Zero-pad inputs / weights (layout plumbing in the wrapper, not compute).
    x_p = jnp.zeros((n_pad, d_pad), f32).at[:n, :d].set(x.astype(f32))
    mask = (batch_ind[None, :] == jnp.arange(b, dtype=batch_ind.dtype)[:, None]).astype(f32)
    mask_p = jnp.zeros((b, n_pad), f32).at[:, :n].set(mask)

    wg_row = jnp.zeros((1, d_pad), f32).at[0, :d].set(params["Wg"][:, 0])
    bg = params["bg"].reshape(1, 1).astype(f32)
    wf_p = jnp.zeros((d_pad, d_pad), f32).at[:d, :d].set(params["Wf"])
    bf_p = jnp.zeros((1, d_pad), f32).at[0, :d].set(params["bf"])
    wt_p = jnp.zeros((d_pad, d_pad), f32).at[:d, :d].set(params["Wt"])
    bt_p = jnp.zeros((1, d_pad), f32).at[0, :d].set(params["bt"])

    call = _build_pooling_call(b, n_pad, d_pad, tile_n)
    out_p = call(x_p, mask_p, wg_row, bg, wf_p, bf_p, wt_p, bt_p)
    return out_p[:, :d]


def _reference_forward(x, batch_ind, params, num_graphs):
    """Pure-JAX reference of GlobalPooling.forward (dense segment softmax)."""
    gate = x @ params["Wg"] + params["bg"]                     # [N, 1]
    feat = x @ params["Wf"] + params["bf"]
    feat = jnp.where(feat >= 0.0, feat, _SLOPE * feat)         # [N, D]
    member = batch_ind[None, :] == jnp.arange(num_graphs)[:, None]   # [B, N]
    s = jnp.where(member, gate[:, 0][None, :], -jnp.inf)
    s = s - jnp.max(s, axis=1, keepdims=True)
    p = jnp.where(member, jnp.exp(s), 0.0)
    alpha = p / jnp.sum(p, axis=1, keepdims=True)
    pooled = alpha @ feat                                      # [B, D]
    y = pooled @ params["Wt"] + params["bt"]
    return jnp.where(y >= 0.0, y, _SLOPE * y)


if __name__ == "__main__":
    key = jax.random.PRNGKey(0)
    emb_dim = 32                    # config.emb_dim (synthetic choice)
    graph_sizes = (120, 80)         # 2 graphs, 200 nodes -> 2 node tiles of 128
    num_graphs = len(graph_sizes)
    n_nodes = sum(graph_sizes)

    k_x, k_g, k_gb, k_f, k_fb, k_t, k_tb = jax.random.split(key, 7)

    def _lin(kw, kb, fan_in, fan_out):
        s = 1.0 / math.sqrt(fan_in)
        w = jax.random.uniform(kw, (fan_in, fan_out), jnp.float32, -s, s)
        b = jax.random.uniform(kb, (fan_out,), jnp.float32, -s, s)
        return w, b

    Wg, bg = _lin(k_g, k_gb, emb_dim, 1)          # att_mask : Linear(D, 1)
    Wf, bf = _lin(k_f, k_fb, emb_dim, emb_dim)    # att_feat : Linear(D, D)
    Wt, bt = _lin(k_t, k_tb, emb_dim, emb_dim)    # transform: Linear(D, D)
    params = dict(Wg=Wg, bg=bg, Wf=Wf, bf=bf, Wt=Wt, bt=bt)

    x = jax.random.normal(k_x, (n_nodes, emb_dim), jnp.float32)
    batch_ind = jnp.concatenate([jnp.full((sz,), g, jnp.int32)
                                 for g, sz in enumerate(graph_sizes)])

    out = global_pooling_forward(x, batch_ind, params, num_graphs=num_graphs)
    out = jax.block_until_ready(out)

    ref = _reference_forward(x, batch_ind, params, num_graphs)
    assert out.shape == (num_graphs, emb_dim)
    assert bool(jnp.all(jnp.isfinite(out)))
    assert bool(jnp.allclose(out, ref, rtol=1e-4, atol=1e-4)), \
        float(jnp.max(jnp.abs(out - ref)))
    print("KERNEL_OK")
</pallas_src>

<mosaic_0001>
module attributes {stable_mosaic.version = 11 : i64} {
  func.func @_global_pooling_kernel(%arg0: i32, %arg1: memref<128x128xf32, #tpu.memory_space<vmem>>, %arg2: memref<2x128xf32, #tpu.memory_space<vmem>>, %arg3: memref<1x128xf32, #tpu.memory_space<vmem>>, %arg4: memref<1x1xf32, #tpu.memory_space<vmem>>, %arg5: memref<128x128xf32, #tpu.memory_space<vmem>>, %arg6: memref<1x128xf32, #tpu.memory_space<vmem>>, %arg7: memref<128x128xf32, #tpu.memory_space<vmem>>, %arg8: memref<1x128xf32, #tpu.memory_space<vmem>>, %arg9: memref<2x128xf32, #tpu.memory_space<vmem>>, %arg10: memref<2x1xf32, #tpu.memory_space<vmem>>, %arg11: memref<2x1xf32, #tpu.memory_space<vmem>>, %arg12: memref<2x128xf32, #tpu.memory_space<vmem>>) attributes {dimension_semantics = [#tpu.dimension_semantics<arbitrary>], iteration_bounds = array<i64: 2>, scalar_prefetch = 0 : i64, scratch_operands = 3 : i64, tpu.core_type = #tpu.core_type<tc>, window_params = [{transform_indices = @transform_0, window_bounds = array<i64: 128, 128>}, {transform_indices = @transform_1, window_bounds = array<i64: 2, 128>}, {pipeline_mode = #tpu.pipeline_mode<synchronous>, transform_indices = @transform_2, window_bounds = array<i64: 1, 128>}, {pipeline_mode = #tpu.pipeline_mode<synchronous>, transform_indices = @transform_3, window_bounds = array<i64: 1, 1>}, {pipeline_mode = #tpu.pipeline_mode<synchronous>, transform_indices = @transform_4, window_bounds = array<i64: 128, 128>}, {pipeline_mode = #tpu.pipeline_mode<synchronous>, transform_indices = @transform_5, window_bounds = array<i64: 1, 128>}, {pipeline_mode = #tpu.pipeline_mode<synchronous>, transform_indices = @transform_6, window_bounds = array<i64: 128, 128>}, {pipeline_mode = #tpu.pipeline_mode<synchronous>, transform_indices = @transform_7, window_bounds = array<i64: 1, 128>}, {pipeline_mode = #tpu.pipeline_mode<synchronous>, transform_indices = @transform_8, window_bounds = array<i64: 2, 128>}]} {
    %c0_i32 = arith.constant 0 : i32
    %0 = arith.cmpi eq, %arg0, %c0_i32 : i32
    %1 = arith.extui %0 : i1 to i32
    %c0_i32_0 = arith.constant 0 : i32
    %2 = arith.cmpi ne, %1, %c0_i32_0 : i32
    scf.if %2 {
      %cst_33 = arith.constant -1.000000e+30 : f32
      %52 = vector.broadcast %cst_33 : f32 to vector<2x1xf32>
      %c0_34 = arith.constant 0 : index
      %c0_35 = arith.constant 0 : index
      %53 = vector.load %arg10[%c0_34, %c0_35] : memref<2x1xf32, #tpu.memory_space<vmem>>, vector<2x1xf32>
      tpu.vector_store %arg10[%c0_34, %c0_35], %52 {strides = array<i32>} : memref<2x1xf32, #tpu.memory_space<vmem>>, vector<2x1xf32>,
      %cst_36 = arith.constant 0.000000e+00 : f32
      %54 = vector.broadcast %cst_36 : f32 to vector<2x1xf32>
      %c0_37 = arith.constant 0 : index
      %c0_38 = arith.constant 0 : index
      %55 = vector.load %arg11[%c0_37, %c0_38] : memref<2x1xf32, #tpu.memory_space<vmem>>, vector<2x1xf32>
      tpu.vector_store %arg11[%c0_37, %c0_38], %54 {strides = array<i32>} : memref<2x1xf32, #tpu.memory_space<vmem>>, vector<2x1xf32>,
      %cst_39 = arith.constant 0.000000e+00 : f32
      %56 = vector.broadcast %cst_39 : f32 to vector<2x128xf32>
      %c0_40 = arith.constant 0 : index
      %c0_41 = arith.constant 0 : index
      %57 = vector.load %arg12[%c0_40, %c0_41] : memref<2x128xf32, #tpu.memory_space<vmem>>, vector<2x128xf32>
      tpu.vector_store %arg12[%c0_40, %c0_41], %56 {strides = array<i32>} : memref<2x128xf32, #tpu.memory_space<vmem>>, vector<2x128xf32>,
    } else {
    }
    %c0 = arith.constant 0 : index
    %c0_1 = arith.constant 0 : index
    %3 = vector.load %arg1[%c0, %c0_1] : memref<128x128xf32, #tpu.memory_space<vmem>>, vector<128x128xf32>
    %c0_2 = arith.constant 0 : index
    %c0_3 = arith.constant 0 : index
    %4 = vector.load %arg2[%c0_2, %c0_3] : memref<2x128xf32, #tpu.memory_space<vmem>>, vector<2x128xf32>
    %c0_4 = arith.constant 0 : index
    %c0_5 = arith.constant 0 : index
    %5 = vector.load %arg3[%c0_4, %c0_5] : memref<1x128xf32, #tpu.memory_space<vmem>>, vector<1x128xf32>
    "tpu.trace_start"() <{level = 10 : i32, message = "od,nd->on"}> : () -> ()
    %cst = arith.constant dense<0.000000e+00> : vector<1x128xf32>
    %6 = tpu.matmul %5, %3, %cst {dimension_numbers = #tpu.dot_dimension_numbers<[1], [1], [0], [0], [0, 0, 1, 0], [], []>} : vector<1x128xf32>, vector<128x128xf32>, vector<1x128xf32> -> vector<1x128xf32>
    "tpu.trace_stop"() : () -> ()
    %c0_6 = arith.constant 0 : index
    %c0_7 = arith.constant 0 : index
    %7 = vector.load %arg4[%c0_6, %c0_7] : memref<1x1xf32, #tpu.memory_space<vmem>>, vector<1x1xf32>
    %8 = vector.broadcast %7 : vector<1x1xf32> to vector<1x128xf32>
    %9 = arith.addf %6, %8 : vector<1x128xf32>
    %cst_8 = arith.constant 0.000000e+00 : f32
    %10 = vector.broadcast %cst_8 : f32 to vector<2x128xf32>
    %11 = arith.cmpf ogt, %4, %10 : vector<2x128xf32>
    %cst_9 = arith.constant -1.000000e+30 : f32
    %12 = vector.shape_cast %9 : vector<1x128xf32> to vector<1x128xf32>
    %13 = vector.broadcast %12 : vector<1x128xf32> to vector<2x128xf32>
    %14 = vector.broadcast %cst_9 : f32 to vector<2x128xf32>
    %15 = arith.select %11, %13, %14 : vector<2x128xi1>, vector<2x128xf32>
    %c0_10 = arith.constant 0 : index
    %c0_11 = arith.constant 0 : index
    %16 = vector.load %arg5[%c0_10, %c0_11] : memref<128x128xf32, #tpu.memory_space<vmem>>, vector<128x128xf32>
    %cst_12 = arith.constant dense<0.000000e+00> : vector<128x128xf32>
    %17 = tpu.matmul %3, %16, %cst_12 {dimension_numbers = #tpu.dot_dimension_numbers<[1], [0], [0], [1], [0, 0, 1, 1], [], []>} : vector<128x128xf32>, vector<128x128xf32>, vector<128x128xf32> -> vector<128x128xf32>
    %c0_13 = arith.constant 0 : index
    %c0_14 = arith.constant 0 : index
    %18 = vector.load %arg6[%c0_13, %c0_14] : memref<1x128xf32, #tpu.memory_space<vmem>>, vector<1x128xf32>
    %19 = vector.broadcast %18 : vector<1x128xf32> to vector<128x128xf32>
    %20 = arith.addf %17, %19 : vector<128x128xf32>
    %cst_15 = arith.constant 0.000000e+00 : f32
    %21 = vector.broadcast %cst_15 : f32 to vector<128x128xf32>
    %22 = arith.cmpf oge, %20, %21 : vector<128x128xf32>
    %cst_16 = arith.constant 0.00999999977 : f32
    %23 = vector.broadcast %cst_16 : f32 to vector<128x128xf32>
    %24 = arith.mulf %23, %20 : vector<128x128xf32>
    %25 = arith.select %22, %20, %24 : vector<128x128xi1>, vector<128x128xf32>
    %c0_17 = arith.constant 0 : index
    %c0_18 = arith.constant 0 : index
    %26 = vector.load %arg10[%c0_17, %c0_18] : memref<2x1xf32, #tpu.memory_space<vmem>>, vector<2x1xf32>
    %cst_19 = arith.constant dense<0xFF800000> : vector<2xf32>
    %27 = vector.multi_reduction <maximumf>, %15, %cst_19 [1] : vector<2x128xf32> to vector<2xf32>
    %28 = vector.shape_cast %27 : vector<2xf32> to vector<2x1xf32>
    %29 = arith.maximumf %26, %28 : vector<2x1xf32>
    %30 = arith.subf %26, %29 : vector<2x1xf32>
    %31 = math.exp %30 : vector<2x1xf32>
    %32 = vector.broadcast %29 : vector<2x1xf32> to vector<2x128xf32>
    %33 = arith.subf %15, %32 : vector<2x128xf32>
    %34 = math.exp %33 : vector<2x128xf32>
    %35 = arith.mulf %34, %4 : vector<2x128xf32>
    %c0_20 = arith.constant 0 : index
    %c0_21 = arith.constant 0 : index
    %36 = vector.load %arg11[%c0_20, %c0_21] : memref<2x1xf32, #tpu.memory_space<vmem>>, vector<2x1xf32>
    %37 = arith.mulf %31, %36 : vector<2x1xf32>
    %cst_22 = arith.constant dense<0.000000e+00> : vector<2xf32>
    %38 = vector.multi_reduction <add>, %35, %cst_22 [1] : vector<2x128xf32> to vector<2xf32>
    %39 = vector.shape_cast %38 : vector<2xf32> to vector<2x1xf32>
    %40 = arith.addf %37, %39 : vector<2x1xf32>
    %c0_23 = arith.constant 0 : index
    %c0_24 = arith.constant 0 : index
    %41 = vector.load %arg11[%c0_23, %c0_24] : memref<2x1xf32, #tpu.memory_space<vmem>>, vector<2x1xf32>
    tpu.vector_store %arg11[%c0_23, %c0_24], %40 {strides = array<i32>} : memref<2x1xf32, #tpu.memory_space<vmem>>, vector<2x1xf32>,
    %c0_25 = arith.constant 0 : index
    %c0_26 = arith.constant 0 : index
    %42 = vector.load %arg12[%c0_25, %c0_26] : memref<2x128xf32, #tpu.memory_space<vmem>>, vector<2x128xf32>
    %43 = vector.broadcast %31 : vector<2x1xf32> to vector<2x128xf32>
    %44 = arith.mulf %43, %42 : vector<2x128xf32>
    %cst_27 = arith.constant dense<0.000000e+00> : vector<2x128xf32>
    %45 = tpu.matmul %35, %25, %cst_27 {dimension_numbers = #tpu.dot_dimension_numbers<[1], [0], [0], [1], [0, 0, 1, 1], [], []>} : vector<2x128xf32>, vector<128x128xf32>, vector<2x128xf32> -> vector<2x128xf32>
    %46 = arith.addf %44, %45 : vector<2x128xf32>
    %c0_28 = arith.constant 0 : index
    %c0_29 = arith.constant 0 : index
    %47 = vector.load %arg12[%c0_28, %c0_29] : memref<2x128xf32, #tpu.memory_space<vmem>>, vector<2x128xf32>
    tpu.vector_store %arg12[%c0_28, %c0_29], %46 {strides = array<i32>} : memref<2x128xf32, #tpu.memory_space<vmem>>, vector<2x128xf32>,
    %c0_30 = arith.constant 0 : index
    %c0_31 = arith.constant 0 : index
    %48 = vector.load %arg10[%c0_30, %c0_31] : memref<2x1xf32, #tpu.memory_space<vmem>>, vector<2x1xf32>
    tpu.vector_store %arg10[%c0_30, %c0_31], %29 {strides = array<i32>} : memref<2x1xf32, #tpu.memory_space<vmem>>, vector<2x1xf32>,
    %c1_i32 = arith.constant 1 : i32
    %49 = arith.cmpi eq, %arg0, %c1_i32 : i32
    %50 = arith.extui %49 : i1 to i32
    %c0_i32_32 = arith.constant 0 : i32
    %51 = arith.cmpi ne, %50, %c0_i32_32 : i32
    scf.if %51 {
      %c0_33 = arith.constant 0 : index
      %c0_34 = arith.constant 0 : index
      %52 = vector.load %arg11[%c0_33, %c0_34] : memref<2x1xf32, #tpu.memory_space<vmem>>, vector<2x1xf32>
      %cst_35 = arith.constant 0.000000e+00 : f32
      %53 = vector.broadcast %cst_35 : f32 to vector<2x1xf32>
      %54 = arith.cmpf ogt, %52, %53 : vector<2x1xf32>
      %cst_36 = arith.constant 1.000000e+00 : f32
      %55 = vector.broadcast %cst_36 : f32 to vector<2x1xf32>
      %56 = arith.divf %55, %52 : vector<2x1xf32>
      %cst_37 = arith.constant 0.000000e+00 : f32
      %57 = vector.broadcast %cst_37 : f32 to vector<2x1xf32>
      %58 = arith.select %54, %56, %57 : vector<2x1xi1>, vector<2x1xf32>
      %c0_38 = arith.constant 0 : index
      %c0_39 = arith.constant 0 : index
      %59 = vector.load %arg12[%c0_38, %c0_39] : memref<2x128xf32, #tpu.memory_space<vmem>>, vector<2x128xf32>
      %60 = vector.broadcast %58 : vector<2x1xf32> to vector<2x128xf32>
      %61 = arith.mulf %59, %60 : vector<2x128xf32>
      %c0_40 = arith.constant 0 : index
      %c0_41 = arith.constant 0 : index
      %62 = vector.load %arg7[%c0_40, %c0_41] : memref<128x128xf32, #tpu.memory_space<vmem>>, vector<128x128xf32>
      %cst_42 = arith.constant dense<0.000000e+00> : vector<2x128xf32>
      %63 = tpu.matmul %61, %62, %cst_42 {dimension_numbers = #tpu.dot_dimension_numbers<[1], [0], [0], [1], [0, 0, 1, 1], [], []>} : vector<2x128xf32>, vector<128x128xf32>, vector<2x128xf32> -> vector<2x128xf32>
      %c0_43 = arith.constant 0 : index
      %c0_44 = arith.constant 0 : index
      %64 = vector.load %arg8[%c0_43, %c0_44] : memref<1x128xf32, #tpu.memory_space<vmem>>, vector<1x128xf32>
      %65 = vector.broadcast %64 : vector<1x128xf32> to vector<2x128xf32>
      %66 = arith.addf %63, %65 : vector<2x128xf32>
      %cst_45 = arith.constant 0.000000e+00 : f32
      %67 = vector.broadcast %cst_45 : f32 to vector<2x128xf32>
      %68 = arith.cmpf oge, %66, %67 : vector<2x128xf32>
      %cst_46 = arith.constant 0.00999999977 : f32
      %69 = vector.broadcast %cst_46 : f32 to vector<2x128xf32>
      %70 = arith.mulf %69, %66 : vector<2x128xf32>
      %71 = arith.select %68, %66, %70 : vector<2x128xi1>, vector<2x128xf32>
      %c0_47 = arith.constant 0 : index
      %c0_48 = arith.constant 0 : index
      %72 = vector.load %arg9[%c0_47, %c0_48] : memref<2x128xf32, #tpu.memory_space<vmem>>, vector<2x128xf32>
      tpu.vector_store %arg9[%c0_47, %c0_48], %71 {strides = array<i32>} : memref<2x128xf32, #tpu.memory_space<vmem>>, vector<2x128xf32>,
    } else {
    }
    return
  }
  func.func @transform_0(%arg0: i32) -> (i32, i32) {
    %c0_i32 = arith.constant 0 : i32
    %c0_i32_0 = arith.constant 0 : i32
    return %arg0, %c0_i32 : i32, i32
  }
  func.func @transform_1(%arg0: i32) -> (i32, i32) {
    %c0_i32 = arith.constant 0 : i32
    %c0_i32_0 = arith.constant 0 : i32
    return %c0_i32, %arg0 : i32, i32
  }
  func.func @transform_2(%arg0: i32) -> (i32, i32) {
    %c0_i32 = arith.constant 0 : i32
    %c0_i32_0 = arith.constant 0 : i32
    %c0_i32_1 = arith.constant 0 : i32
    return %c0_i32, %c0_i32_0 : i32, i32
  }
  func.func @transform_3(%arg0: i32) -> (i32, i32) {
    %c0_i32 = arith.constant 0 : i32
    %c0_i32_0 = arith.constant 0 : i32
    %c0_i32_1 = arith.constant 0 : i32
    return %c0_i32, %c0_i32_0 : i32, i32
  }
  func.func @transform_4(%arg0: i32) -> (i32, i32) {
    %c0_i32 = arith.constant 0 : i32
    %c0_i32_0 = arith.constant 0 : i32
    %c0_i32_1 = arith.constant 0 : i32
    return %c0_i32, %c0_i32_0 : i32, i32
  }
  func.func @transform_5(%arg0: i32) -> (i32, i32) {
    %c0_i32 = arith.constant 0 : i32
    %c0_i32_0 = arith.constant 0 : i32
    %c0_i32_1 = arith.constant 0 : i32
    return %c0_i32, %c0_i32_0 : i32, i32
  }
  func.func @transform_6(%arg0: i32) -> (i32, i32) {
    %c0_i32 = arith.constant 0 : i32
    %c0_i32_0 = arith.constant 0 : i32
    %c0_i32_1 = arith.constant 0 : i32
    return %c0_i32, %c0_i32_0 : i32, i32
  }
  func.func @transform_7(%arg0: i32) -> (i32, i32) {
    %c0_i32 = arith.constant 0 : i32
    %c0_i32_0 = arith.constant 0 : i32
    %c0_i32_1 = arith.constant 0 : i32
    return %c0_i32, %c0_i32_0 : i32, i32
  }
  func.func @transform_8(%arg0: i32) -> (i32, i32) {
    %c0_i32 = arith.constant 0 : i32
    %c0_i32_0 = arith.constant 0 : i32
    %c0_i32_1 = arith.constant 0 : i32
    return %c0_i32, %c0_i32_0 : i32, i32
  }
}

</mosaic_0001>

<bundles_post_ra>
// kernel: global_pooling_forward.1
= control target key start
LH: loop header
LB: loop body
LE: loop exit
PB: predicated region body
PF: predicated region fallthrough
CT: control target
= control target key end

     0   :  { %s1570_s0 = inlined_call_operand.vmem [shape: f32[256,128], index: 0, kind: input, shape index: {}]   ;;  %s1571_s1 = inlined_call_operand.vmem [shape: f32[2,256], index: 1, kind: input, shape index: {}]   ;;  %s1572_s2 = inlined_call_operand.vmem [shape: f32[1,128], index: 2, kind: input, shape index: {}]   ;;  %s1573_s3 = inlined_call_operand.<no memory space> [shape: f32[1,1], index: 3, kind: input, shape index: {}]   ;;  %s1574_s4 = inlined_call_operand.vmem [shape: f32[128,128], index: 4, kind: input, shape index: {}]   ;;  %s1575_s5 = inlined_call_operand.vmem [shape: f32[1,128], index: 5, kind: input, shape index: {}]   ;;  %s1576_s6 = inlined_call_operand.vmem [shape: f32[128,128], index: 6, kind: input, shape index: {}]   ;;  %s1577_s7 = inlined_call_operand.vmem [shape: f32[1,128], index: 7, kind: input, shape index: {}]   ;;  %s1578_s8 = inlined_call_operand.hbm [shape: f32[2,128], index: 8, kind: output, shape index: {}]  }
   0x1   :  { %v13_v0 = vstv %s1573_s3 }
   0x2   :  { %14 = vst [vmem:[#allocation5] sm:$0x1] %v13_v0 }
   0x3   :  { %15 = vsyncpa [#allocation7], 0  ;;  %s1302_s29 = smov 0  }
   0x4 LB: > { %s1308_s30 = sadd.s32 4294967295, %s1243_s29   ;;  %p921_p0 = scmp.ge.s32.totalorder %s1243_s29, 1  ;;  %s1243_s29 = sphi %s1302_s29, %s21_s29  }
   0x5   : > { %p270_p1 = scmp.lt.s32.totalorder %s1243_s29, 3 }
   0x7   : > { %p271_p2 = pnand %p921_p0, %p270_p1 }
   0x8   : > { %s922_s3 = sshll.u32 (!%p271_p2), %s1308_s30, 4  ;;  %p309_p3 = scmp.lt.s32.totalorder (!%p271_p2), %s1308_s30, 1 }
   0x9   : > { %274 = sbr.rel (%p271_p2) target bundleno = 1123 (0x463), region = 52  ;;  %p304_p4 = scmp.lt.s32.totalorder (!%p271_p2), %s922_s3, 31 }
   0xa   : > { %p925_p5 = scmp.ne.s32.totalorder (!%p271_p2), %s1308_s30, 0 }
   0xe   : > { %s310_s9 = scalar_select %p309_p3, %s1308_s30, 1 }
   0xf   : > { %s1580_s3 = smov (!%p304_p4, %s922_s3), 31  ;;  %316 = sbr.rel (%p925_p5) target bundleno = 23 (0x17), region = 56 }
  0x10   : > { %s924_s10 = sshll.u32 %s310_s9, 1  ;;  %s923_s11 = sshll.u32 %s1580_s3, 3 }
  0x11   : > { %s1318_s14 = scalar_lea.vmem %s1571_s1, %s924_s10  ;;  %s1323_s17 = scalar_lea.vmem %s1570_s0, %s923_s11 }
  0x14   : > { %vm317_vm0 = vcmask 1024   ;;  %v1245_v1 = vmov -1e+30   ;;  %v1246_v2 = vmov 0.0  }
  0x15   : > { %318 = vst.msk [vmem:[#allocation2] sm:$0x3] %vm317_vm0, %v1245_v1  ;;  %319 = vst.msk [vmem:[#allocation3] sm:$0x3] %vm317_vm0, %v1246_v2 }
  0x16   : > { %320 = vst [vmem:[#allocation4] sm:$0x3] %v1246_v2 }
  0x17 PF: > { %v1327_v3 = vld [vmem:[%s1323_s17 + $0x78] sm:$0xff]  ;;  %v1247_v4 = vmov 0.0   ;;  %vm1248_vm1 = vmmov 0   ;;  %v1249_v5 = vmov 0   ;;  %v1335_v6 = vld [vmem:[%s1323_s17 + $0x70] sm:$0xff]  ;;  %v1346_v10 = vld [vmem:[%s1323_s17 + $0x68] sm:$0xff]  ;;  %v345_v39 = vlaneseq }
  0x18   : > { %1016 = vmatprep.subr.mxu0 %v1247_v4  ;;  %1048 = vmatprep.mubr.msk.f32.mxu0 %vm1248_vm1, %v1247_v4  ;;  %v339_v7 = vld [vmem:[#allocation5] sm:$0x1]  ;;  %v440_v8 = vld [vmem:[%s1574_s4 + $0x78] sm:$0xff]  ;;  %v439_v9 = vld [vmem:[%s1574_s4 + $0x70] sm:$0xff]  ;;  %vm642_vm3 = vcmask 1041408   ;;  %p927_p6 = scmp.ne.s32.totalorder %s1308_s30, 1 }
  0x19   : > { %1017 = vmatpush3.xpose.msra.mxu0 %v1327_v3  ;;  %1200 = vset.pattern.permute.xlu0 %v1249_v5  ;;  %v1349_v11 = vld [vmem:[%s1323_s17] sm:$0xff]  ;;  %v438_v12 = vld [vmem:[%s1574_s4 + $0x68] sm:$0xff]  ;;  %v436_v15 = vld [vmem:[%s1574_s4 + $0x58] sm:$0xff]  ;;  %v346_v40 = vshrl.u32 %v345_v39, 7 }
  0x1a   : > { %1018 = vmatprep.subr.mxu0 %v1247_v4  ;;  %1201 = vset.pattern.permute.xlu1 %v1249_v5  ;;  %v437_v13 = vld [vmem:[%s1574_s4 + $0x60] sm:$0xff]  ;;  %v435_v16 = vld [vmem:[%s1574_s4 + $0x50] sm:$0xff]  ;;  %v1372_v17 = vld [vmem:[%s1323_s17 + $0x58] sm:$0xff] }
  0x1b   : > { %342 = vperm.xlu0 %1200, %v339_v7   ;;  %1051 = vmatprep.subr.mxu1 %v440_v8  ;;  %v1361_v14 = vld [vmem:[%s1323_s17 + $0x60] sm:$0xff]  ;;  %v434_v18 = vld [vmem:[%s1574_s4 + $0x48] sm:$0xff]  ;;  %v1383_v20 = vld [vmem:[%s1323_s17 + $0x50] sm:$0xff]  ;;  %v347_v41 = vsub.s32 0, %v346_v40 }
  0x1c   : > { %1052 = vmatpush3.msra.mxu1 %v440_v8  ;;  %1083 = vmatprep.mubr.f32.mxu1 %v1349_v11  ;;  %v433_v19 = vld [vmem:[%s1574_s4 + $0x40] sm:$0xff]  ;;  %v432_v21 = vld [vmem:[%s1574_s4 + $0x38] sm:$0xff]  ;;  %v431_v22 = vld [vmem:[%s1574_s4 + $0x30] sm:$0xff] }
  0x1d   : > { %1019 = vmatpush3.xpose.msra.mxu0 %v1335_v6  ;;  %1053 = vmatprep.subr.mxu1 %v439_v9  ;;  %v330_v23 = vld [vmem:[%s1323_s17 + $0x48] sm:$0xff]  ;;  %v429_v25 = vld [vmem:[%s1574_s4 + $0x20] sm:$0xff]  ;;  %v428_v27 = vld [vmem:[%s1574_s4 + $0x18] sm:$0xff] }
  0x1e   : > { %1020 = vmatprep.subr.mxu0 %v1247_v4  ;;  %1054 = vmatpush3.msra.mxu1 %v439_v9  ;;  %v430_v24 = vld [vmem:[%s1574_s4 + $0x28] sm:$0xff]  ;;  %v329_v26 = vld [vmem:[%s1323_s17 + $0x40] sm:$0xff]  ;;  %v427_v28 = vld [vmem:[%s1574_s4 + $0x10] sm:$0xff] }
  0x1f   : > { %1055 = vmatprep.subr.mxu1 %v438_v12  ;;  %v328_v29 = vld [vmem:[%s1323_s17 + $0x38] sm:$0xff]  ;;  %v426_v30 = vld [vmem:[%s1574_s4 + $0x8] sm:$0xff]  ;;  %v425_v31 = vld [vmem:[%s1574_s4] sm:$0xff] }
  0x20   : > { %1056 = vmatpush3.msra.mxu1 %v438_v12  ;;  %v327_v32 = vld [vmem:[%s1323_s17 + $0x30] sm:$0xff]  ;;  %v322_v33 = vld [vmem:[%s1323_s17 + $0x8] sm:$0xff]  ;;  %v324_v36 = vld [vmem:[%s1323_s17 + $0x18] sm:$0xff] }
  0x21   : > { %1021 = vmatpush3.xpose.msra.mxu0 %v1346_v10  ;;  %1057 = vmatprep.subr.mxu1 %v437_v13  ;;  %v326_v34 = vld [vmem:[%s1323_s17 + $0x28] sm:$0xff]  ;;  %v323_v35 = vld [vmem:[%s1323_s17 + $0x10] sm:$0xff]  ;;  %v325_v37 = vld [vmem:[%s1323_s17 + $0x20] sm:$0xff] }
  0x22   : > { %1022 = vmatprep.subr.mxu0 %v1247_v4  ;;  %1058 = vmatpush3.msra.mxu1 %v437_v13  ;;  %v338_v38 = vld [vmem:[%s1572_s2] sm:$0x1] }
  0x23   : > { %1059 = vmatprep.subr.mxu1 %v436_v15  ;;  %v1443_v44 = vld [vmem:[%s1318_s14] sm:$0x3] }
  0x24   : > { %1060 = vmatpush3.msra.mxu1 %v436_v15  ;;  %vm419_vm2 = vcmp.gt.f32.partialorder %v1443_v44, 0.0  ;;  %v1461_v0 = vld [vmem:[%s1575_s5] ss:$0 sm:$0xff] }
  0x25   : > { %1023 = vmatpush3.xpose.msra.mxu0 %v1361_v14  ;;  %1061 = vmatprep.subr.mxu1 %v435_v16 }
  0x26   : > { %1024 = vmatprep.subr.mxu0 %v1247_v4  ;;  %1062 = vmatpush3.msra.mxu1 %v435_v16 }
  0x27   : > { %1063 = vmatprep.subr.mxu1 %v434_v18 }
  0x28   : > { %1064 = vmatpush3.msra.mxu1 %v434_v18 }
  0x29   : > { %1025 = vmatpush3.xpose.msra.mxu0 %v1372_v17  ;;  %1065 = vmatprep.subr.mxu1 %v433_v19 }
  0x2a   : > { %1026 = vmatprep.subr.mxu0 %v1247_v4  ;;  %1066 = vmatpush3.msra.mxu1 %v433_v19 }
  0x2b   : > { %1067 = vmatprep.subr.mxu1 %v432_v21 }
  0x2c   : > { %1068 = vmatpush3.msra.mxu1 %v432_v21 }
  0x2d   : > { %1027 = vmatpush3.xpose.msra.mxu0 %v1383_v20  ;;  %1069 = vmatprep.subr.mxu1 %v431_v22 }
  0x2e   : > { %1028 = vmatprep.subr.mxu0 %v1247_v4  ;;  %1070 = vmatpush3.msra.mxu1 %v431_v22 }
  0x2f   : > { %1071 = vmatprep.subr.mxu1 %v430_v24 }
  0x30   : > { %1072 = vmatpush3.msra.mxu1 %v430_v24 }
  0x31   : > { %1029 = vmatpush3.xpose.msra.mxu0 %v330_v23  ;;  %1073 = vmatprep.subr.mxu1 %v429_v25 }
  0x32   : > { %1030 = vmatprep.subr.mxu0 %v1247_v4  ;;  %1074 = vmatpush3.msra.mxu1 %v429_v25 }
  0x33   : > { %1075 = vmatprep.subr.mxu1 %v428_v27 }
  0x34   : > { %1076 = vmatpush3.msra.mxu1 %v428_v27 }
  0x35   : > { %1031 = vmatpush3.xpose.msra.mxu0 %v329_v26  ;;  %1077 = vmatprep.subr.mxu1 %v427_v28 }
  0x36   : > { %1032 = vmatprep.subr.mxu0 %v1247_v4  ;;  %1078 = vmatpush3.msra.mxu1 %v427_v28 }
  0x37   : > { %1079 = vmatprep.subr.mxu1 %v426_v30 }
  0x38   : > { %1080 = vmatpush3.msra.mxu1 %v426_v30 }
  0x39   : > { %1033 = vmatpush3.xpose.msra.mxu0 %v328_v29  ;;  %1081 = vmatprep.subr.mxu1 %v425_v31 }
  0x3a   : > { %1034 = vmatprep.subr.mxu0 %v1247_v4  ;;  %1082 = vmatpush3.msra.mxu1 %v425_v31 }
  0x3b   : > { %1084 = vmatmul.mubr.f32.vlgmr.msra.gmra.mxu1 %v322_v33  ;;  %1107 = vmatprep.subr.mxu1 %v1247_v4 }
  0x3c   : > { %1086 = vmatprep.mubr.f32.mxu1 %v323_v35 }
  0x3d   : > { %1035 = vmatpush3.xpose.msra.mxu0 %v327_v32 }
  0x3e   : > { %1036 = vmatprep.subr.mxu0 %v1247_v4 }
  0x3f   : > { %1087 = vmatmul.mubr.f32.gmra.mxu1 %v324_v36 }
  0x40   : > { %1089 = vmatprep.mubr.f32.mxu1 %v325_v37 }
  0x41   : > { %1037 = vmatpush3.xpose.msra.mxu0 %v326_v34 }
  0x42   : > { %1038 = vmatprep.subr.mxu0 %v1247_v4 }
  0x43   : > { %1090 = vmatmul.mubr.f32.gmra.mxu1 %v326_v34 }
  0x44   : > { %1092 = vmatprep.mubr.f32.mxu1 %v327_v32 }
  0x45   : > { %1039 = vmatpush3.xpose.msra.mxu0 %v325_v37 }
  0x46   : > { %1040 = vmatprep.subr.mxu0 %v1247_v4 }
  0x47   : > { %1093 = vmatmul.mubr.f32.gmra.mxu1 %v328_v29 }
  0x48   : > { %1095 = vmatprep.mubr.f32.mxu1 %v329_v26 }
  0x49   : > { %1041 = vmatpush3.xpose.msra.mxu0 %v324_v36 }
  0x4a   : > { %1042 = vmatprep.subr.mxu0 %v1247_v4 }
  0x4b   : > { %1096 = vmatmul.mubr.f32.gmra.mxu1 %v330_v23 }
  0x4c   : > { %1098 = vmatprep.mubr.f32.mxu1 %v1383_v20 }
  0x4d   : > { %1043 = vmatpush3.xpose.msra.mxu0 %v323_v35 }
  0x4e   : > { %1044 = vmatprep.subr.mxu0 %v1247_v4 }
  0x4f   : > { %1099 = vmatmul.mubr.f32.gmra.mxu1 %v1372_v17 }
  0x50   : > { %1101 = vmatprep.mubr.f32.mxu1 %v1361_v14 }
  0x51   : > { %1045 = vmatpush3.xpose.msra.mxu0 %v322_v33 }
  0x52   : > { %1046 = vmatprep.subr.mxu0 %v1247_v4 }
  0x53   : > { %1102 = vmatmul.mubr.f32.gmra.mxu1 %v1346_v10 }
  0x54   : > { %1104 = vmatprep.mubr.f32.mxu1 %v1335_v6 }
  0x55   : > { %1047 = vmatpush3.xpose.msra.mxu0 %v1349_v11 }
  0x57   : > { %1105 = vmatmul.mubr.f32.gmra.mxu1 %v1327_v3 }
  0x58   : > { %1049 = vmatmul.mubr.f32.vlgmr.msra.gmra.mxu0 %v338_v38  ;;  %1139 = vmatprep.mubr.msk.f32.mxu1 %vm1248_vm1, %v1247_v4 }
  0x96   : > { %v343_v42 = vpop.permute.xlu0 %342 }
  0x97   : > { %v348_v43 = vrot.slane %v343_v42, %v347_v41 }
  0xfb   : > { %v1450_v51 = vpop.f32.mrf.mxu1 }
  0xfd   : > { %v1452_v52 = vpop.f32.mrf.mxu1 }
  0xff   : > { %v1454_v53 = vpop.f32.mrf.mxu1 }
 0x100   : > { %v530_v35 = vadd.f32 %v1454_v53, %v1461_v0 }
 0x101   : > { %v1456_v54 = vpop.f32.mrf.mxu1 }
 0x102   : > { %v525_v38 = vadd.f32 %v1461_v0, %v1456_v54  ;;  %v612_v42 = vmul.f32 0.01, %v530_v35  ;;  %vm596_vm0 = vcmp.ge.f32.partialorder %v530_v35, 0.0 }
 0x103   : > { %v1091_v55 = vpop.f32.mrf.mxu1 }
 0x104   : > { %v540_v29 = vadd.f32 %v1091_v55, %v1461_v0  ;;  %vm595_vm1 = vcmp.ge.f32.partialorder %v525_v38, 0.0  ;;  %v641_v55 = vld [vmem:[#allocation2] sm:$0x3] }
 0x105   : > { %v534_v56 = vpop.f32.mrf.mxu1 }
 0x106   : > { %v535_v32 = vadd.f32 %v1461_v0, %v534_v56  ;;  %v614_v36 = vmul.f32 0.01, %v540_v29  ;;  %vm598_vm14 = vcmp.ge.f32.partialorder %v540_v29, 0.0 }
 0x107   : > { %v1094_v57 = vpop.f32.mrf.mxu1 }
 0x108   : > { %v550_v23 = vadd.f32 %v1094_v57, %v1461_v0  ;;  %v613_v39 = vmul.f32 0.01, %v535_v32  ;;  %vm597_vm15 = vcmp.ge.f32.partialorder %v535_v32, 0.0 }
 0x109   : > { %v544_v58 = vpop.f32.mrf.mxu1 }
 0x10a   : > { %v545_v26 = vadd.f32 %v1461_v0, %v544_v58  ;;  %v616_v30 = vmul.f32 0.01, %v550_v23  ;;  %vm600_vm12 = vcmp.ge.f32.partialorder %v550_v23, 0.0 }
 0x10b   : > { %v1097_v59 = vpop.f32.mrf.mxu1 }
 0x10c   : > { %v560_v16 = vadd.f32 %v1097_v59, %v1461_v0  ;;  %v615_v33 = vmul.f32 0.01, %v545_v26  ;;  %vm599_vm13 = vcmp.ge.f32.partialorder %v545_v26, 0.0  ;;  %v632_v37 = vsel %vm600_vm12, %v550_v23, %v616_v30 }
 0x10d   : > { %v554_v60 = vpop.f32.mrf.mxu1 }
 0x10e   : > { %v555_v20 = vadd.f32 %v1461_v0, %v554_v60  ;;  %v618_v24 = vmul.f32 0.01, %v560_v16  ;;  %vm602_vm10 = vcmp.ge.f32.partialorder %v560_v16, 0.0  ;;  %v631_v40 = vsel %vm599_vm13, %v545_v26, %v615_v33 }
 0x10f   : > { %v1100_v61 = vpop.f32.mrf.mxu1 }
 0x110   : > { %v570_v7 = vadd.f32 %v1100_v61, %v1461_v0  ;;  %v617_v27 = vmul.f32 0.01, %v555_v20  ;;  %vm601_vm11 = vcmp.ge.f32.partialorder %v555_v20, 0.0  ;;  %v634_v31 = vsel %vm602_vm10, %v560_v16, %v618_v24 }
 0x111   : > { %v564_v62 = vpop.f32.mrf.mxu1 }
 0x112   : > { %v565_v12 = vadd.f32 %v1461_v0, %v564_v62  ;;  %v620_v17 = vmul.f32 0.01, %v570_v7  ;;  %vm604_vm8 = vcmp.ge.f32.partialorder %v570_v7, 0.0  ;;  %v633_v34 = vsel %vm601_vm11, %v555_v20, %v617_v27 }
 0x113   : > { %v1103_v63 = vpop.f32.mrf.mxu1 }
 0x114   : > { %v580_v2 = vadd.f32 %v1103_v63, %v1461_v0  ;;  %v619_v21 = vmul.f32 0.01, %v565_v12  ;;  %vm603_vm9 = vcmp.ge.f32.partialorder %v565_v12, 0.0  ;;  %v636_v25 = vsel %vm604_vm8, %v570_v7, %v620_v17  ;;  %v667_v7 = vld [vmem:[#allocation4] sm:$0x3] }
 0x115   : > { %v574_v1 = vpop.f32.mrf.mxu1 }
 0x116   : > { %v575_v5 = vadd.f32 %v1461_v0, %v574_v1  ;;  %v622_v9 = vmul.f32 0.01, %v580_v2  ;;  %vm606_vm5 = vcmp.ge.f32.partialorder %v580_v2, 0.0  ;;  %v635_v28 = vsel %vm603_vm9, %v565_v12, %v619_v21 }
 0x117   : > { %v1106_v3 = vpop.f32.mrf.mxu1 }
 0x118   : > { %v415_v45 = vpop.f32.mrf.mxu0  ;;  %v590_v6 = vadd.f32 %v1106_v3, %v1461_v0  ;;  %v621_v13 = vmul.f32 0.01, %v575_v5  ;;  %vm605_vm7 = vcmp.ge.f32.partialorder %v575_v5, 0.0  ;;  %v638_v19 = vsel %vm606_vm5, %v580_v2, %v622_v9  ;;  %v659_v2 = vld [vmem:[#allocation3] sm:$0x3] }
 0x119   : > { %v416_v46 = vadd.f32 %v415_v45, %v348_v43  ;;  %v584_v8 = vpop.f32.mrf.mxu1  ;;  %v630_v43 = vsel %vm598_vm14, %v540_v29, %v614_v36  ;;  %v515_v45 = vadd.f32 %v1461_v0, %v1452_v52  ;;  %vm665_vm5 = vcmask 1024  }
 0x11a   : > { %v1050_v47 = vpop.f32.mrf.mxu0  ;;  %vm608_vm4 = vcmp.ge.f32.partialorder %v590_v6, 0.0  ;;  %v624_v10 = vmul.f32 0.01, %v590_v6  ;;  %v585_v11 = vadd.f32 %v1461_v0, %v584_v8  ;;  %v637_v22 = vsel %vm605_vm7, %v575_v5, %v621_v13 }
 0x11b   : > { %v423_v48 = vrot.slane %v416_v46, %v347_v41  ;;  %v520_v41 = vadd.f32 %v1450_v51, %v1461_v0  ;;  %v611_v46 = vmul.f32 0.01, %v525_v38  ;;  %v629_v47 = vsel %vm597_vm15, %v535_v32, %v613_v39 }
 0x11c   : > { %vm607_vm6 = vcmp.ge.f32.partialorder %v585_v11, 0.0  ;;  %v623_v14 = vmul.f32 0.01, %v585_v11  ;;  %v640_v15 = vsel %vm608_vm4, %v590_v6, %v624_v10  ;;  %v609_v51 = vmul.f32 0.01, %v515_v45 }
 0x11d   : > { %v1446_v49 = vsel %vm419_vm2, %v423_v48, -1e+30  ;;  %1108 = vmatpush3.msra.mxu1 %v640_v15  ;;  %v610_v48 = vmul.f32 0.01, %v520_v41  ;;  %vm594_vm2 = vcmp.ge.f32.partialorder %v520_v41, 0.0  ;;  %v627_v53 = vsel %vm595_vm1, %v525_v38, %v611_v46 }
 0x11e   : > { %v643_v50 = vsel %vm642_vm3, %v1446_v49, -inf  ;;  %1109 = vmatprep.subr.mxu1 %v1247_v4  ;;  %v639_v18 = vsel %vm607_vm6, %v585_v11, %v623_v14  ;;  %vm593_vm4 = vcmp.ge.f32.partialorder %v515_v45, 0.0 }
 0x11f   : > { %644 = vmax.xlane.f32.xlu0 %v643_v50  ;;  %1110 = vmatpush3.msra.mxu1 %v639_v18  ;;  %v628_v50 = vsel %vm596_vm0, %v530_v35, %v612_v42  ;;  %v626_v52 = vsel %vm594_vm2, %v520_v41, %v610_v48  ;;  %v625_v54 = vsel %vm593_vm4, %v515_v45, %v609_v51 }
 0x120   : > { %1111 = vmatprep.subr.mxu1 %v1247_v4 }
 0x121   : > { %1112 = vmatpush3.msra.mxu1 %v638_v19 }
 0x122   : > { %1113 = vmatprep.subr.mxu1 %v1247_v4 }
 0x123   : > { %1114 = vmatpush3.msra.mxu1 %v637_v22 }
 0x124   : > { %1115 = vmatprep.subr.mxu1 %v1247_v4 }
 0x125   : > { %1116 = vmatpush3.msra.mxu1 %v636_v25 }
 0x126   : > { %1117 = vmatprep.subr.mxu1 %v1247_v4 }
 0x127   : > { %1118 = vmatpush3.msra.mxu1 %v635_v28 }
 0x128   : > { %1119 = vmatprep.subr.mxu1 %v1247_v4 }
 0x129   : > { %1120 = vmatpush3.msra.mxu1 %v634_v31 }
 0x12a   : > { %1121 = vmatprep.subr.mxu1 %v1247_v4 }
 0x12b   : > { %1122 = vmatpush3.msra.mxu1 %v633_v34 }
 0x12c   : > { %1123 = vmatprep.subr.mxu1 %v1247_v4 }
 0x12d   : > { %1124 = vmatpush3.msra.mxu1 %v632_v37 }
 0x12e   : > { %1125 = vmatprep.subr.mxu1 %v1247_v4 }
 0x12f   : > { %1126 = vmatpush3.msra.mxu1 %v631_v40 }
 0x130   : > { %1127 = vmatprep.subr.mxu1 %v1247_v4 }
 0x131   : > { %1128 = vmatpush3.msra.mxu1 %v630_v43 }
 0x132   : > { %1129 = vmatprep.subr.mxu1 %v1247_v4 }
 0x133   : > { %1130 = vmatpush3.msra.mxu1 %v629_v47 }
 0x134   : > { %1131 = vmatprep.subr.mxu1 %v1247_v4 }
 0x135   : > { %1132 = vmatpush3.msra.mxu1 %v628_v50 }
 0x136   : > { %1133 = vmatprep.subr.mxu1 %v1247_v4 }
 0x137   : > { %1134 = vmatpush3.msra.mxu1 %v627_v53 }
 0x138   : > { %1135 = vmatprep.subr.mxu1 %v1247_v4 }
 0x139   : > { %1136 = vmatpush3.msra.mxu1 %v626_v52 }
 0x13a   : > { %1137 = vmatprep.subr.mxu1 %v1247_v4 }
 0x13b   : > { %1138 = vmatpush3.msra.mxu1 %v625_v54 }
 0x1a8   : > { %v645_v56 = vpop.xlane.xlu0 %644 }
 0x1a9   : > { %v646_v57 = vmax.f32 %v641_v55, %v645_v56 }
 0x1ab   : > { %v647_v58 = vsub.f32 %v641_v55, %v646_v57  ;;  %746 = vst.msk [vmem:[#allocation2] sm:$0x3] %vm665_vm5, %v646_v57  ;;  %652 = vperm.xlu1 %1201, %v646_v57  }
 0x1ad   : > { %v648_v59 = vmul.f32 1.442695, %v647_v58 }
 0x1af   : > { %1202 = vpow2.f32 %v648_v59 }
 0x1bc   : > { %v1203_v60 = vpop.eup %1202 }
 0x1bd   : > { %670 = vperm.xlu0 %1200, %v1203_v60   ;;  %v660_v3 = vmul.f32 %v1203_v60, %v659_v2 }
 0x226   : > { %v653_v61 = vpop.permute.xlu1 %652 }
 0x227   : > { %v655_v62 = vsub.f32 %v1446_v49, %v653_v61 }
 0x229   : > { %v656_v63 = vmul.f32 1.442695, %v655_v62 }
 0x22b   : > { %1204 = vpow2.f32 %v656_v63 }
 0x238   : > { %v1205_v0 = vpop.eup %1204  ;;  %v671_v8 = vpop.permute.xlu0 %670 }
 0x239   : > { %v658_v4 = vmul.f32 %v1205_v0, %v1443_v44  ;;  %v673_v9 = vmul.f32 %v671_v8, %v667_v7 }
 0x23b   : > { %1140 = vmatmul.mubr.f32.vlgmr.msra.gmra.mxu1 %v658_v4  ;;  %v661_v1 = vsel %vm642_vm3, %v658_v4, 0.0 }
 0x23c   : > { %662 = vadd.xlane.f32.xlu1 %v661_v1 }
 0x2c5   : > { %v663_v5 = vpop.xlane.xlu1 %662 }
 0x2c6   : > { %v664_v6 = vadd.f32 %v663_v5, %v660_v3 }
 0x2c8   : > { %666 = vst.msk [vmem:[#allocation3] sm:$0x3] %vm665_vm5, %v664_v6 }
 0x2fa   : > { %750 = sbr.rel (%p927_p6) target bundleno = 1108 (0x454), region = 60 }
 0x2fb   : > { %v740_v10 = vpop.f32.mrf.mxu1 }
 0x2fc   : > { %v744_v49 = vadd.f32 %v740_v10, %v673_v9 }
 0x2fd   : > { %v1141_v11 = vpop.f32.mrf.mxu1 }
 0x2fe   : > { %745 = vst [vmem:[#allocation4] sm:$0x3] %v744_v49 }
 0x2ff   : > { %v751_v44 = vld [vmem:[#allocation3] sm:$0x3]  ;;  %v778_v12 = vld [vmem:[%s1576_s6 + $0x78] sm:$0xff]  ;;  %v1250_v13 = vmov 0   ;;  %v1251_v14 = vmov 0.0   ;;  %v777_v15 = vld [vmem:[%s1576_s6 + $0x70] sm:$0xff] }
 0x300   : > { %1206 = vset.pattern.permute.xlu0 %v1250_v13  ;;  %1207 = vrcp.f32 %v751_v44  ;;  %1142 = vmatprep.subr.mxu0 %v1251_v14  ;;  %v776_v16 = vld [vmem:[%s1576_s6 + $0x68] sm:$0xff]  ;;  %v775_v17 = vld [vmem:[%s1576_s6 + $0x60] sm:$0xff]  ;;  %v774_v18 = vld [vmem:[%s1576_s6 + $0x58] sm:$0xff]  ;;  %vm752_vm3 = vcmp.gt.f32.partialorder %v751_v44, 0.0  ;;  %vm1252_vm6 = vmmov 0  }
 0x301   : > { %1143 = vmatpush3.msra.mxu0 %v778_v12  ;;  %v773_v19 = vld [vmem:[%s1576_s6 + $0x50] sm:$0xff]  ;;  %v772_v20 = vld [vmem:[%s1576_s6 + $0x48] sm:$0xff]  ;;  %v771_v21 = vld [vmem:[%s1576_s6 + $0x40] sm:$0xff]  ;;  %1174 = vmatprep.mubr.msk.f32.mxu0 %vm1252_vm6, %v1251_v14 }
 0x302   : > { %1144 = vmatprep.subr.mxu0 %v1251_v14  ;;  %v770_v24 = vld [vmem:[%s1576_s6 + $0x38] sm:$0xff]  ;;  %v769_v25 = vld [vmem:[%s1576_s6 + $0x30] sm:$0xff]  ;;  %v768_v26 = vld [vmem:[%s1576_s6 + $0x28] sm:$0xff] }
 0x303   : > { %1145 = vmatpush3.msra.mxu0 %v777_v15  ;;  %v767_v27 = vld [vmem:[%s1576_s6 + $0x20] sm:$0xff]  ;;  %v766_v28 = vld [vmem:[%s1576_s6 + $0x18] sm:$0xff]  ;;  %v765_v29 = vld [vmem:[%s1576_s6 + $0x10] sm:$0xff] }
 0x304   : > { %1146 = vmatprep.subr.mxu0 %v1251_v14  ;;  %v764_v30 = vld [vmem:[%s1576_s6 + $0x8] sm:$0xff]  ;;  %v763_v31 = vld [vmem:[%s1576_s6] sm:$0xff] }
 0x305   : > { %1147 = vmatpush3.msra.mxu0 %v776_v16  ;;  %v756_v32 = vld [vmem:[#allocation4] sm:$0x3]  ;;  %v928_v35 = vld [vmem:[%s1577_s7] ss:$0 sm:$0xff] }
 0x306   : > { %1148 = vmatprep.subr.mxu0 %v1251_v14 }
 0x307   : > { %1149 = vmatpush3.msra.mxu0 %v775_v17 }
 0x308   : > { %1150 = vmatprep.subr.mxu0 %v1251_v14 }
 0x309   : > { %1151 = vmatpush3.msra.mxu0 %v774_v18 }
 0x30a   : > { %1152 = vmatprep.subr.mxu0 %v1251_v14 }
 0x30b   : > { %1153 = vmatpush3.msra.mxu0 %v773_v19 }
 0x30c   : > { %1154 = vmatprep.subr.mxu0 %v1251_v14 }
 0x30d   : > { %v1208_v22 = vpop.eup %1207  ;;  %1155 = vmatpush3.msra.mxu0 %v772_v20 }
 0x30e   : > { %v755_v23 = vsel %vm752_vm3, %v1208_v22, 0.0  ;;  %1156 = vmatprep.subr.mxu0 %v1251_v14 }
 0x30f   : > { %759 = vperm.xlu0 %1206, %v755_v23   ;;  %1157 = vmatpush3.msra.mxu0 %v771_v21 }
 0x310   : > { %1158 = vmatprep.subr.mxu0 %v1251_v14 }
 0x311   : > { %1159 = vmatpush3.msra.mxu0 %v770_v24 }
 0x312   : > { %1160 = vmatprep.subr.mxu0 %v1251_v14 }
 0x313   : > { %1161 = vmatpush3.msra.mxu0 %v769_v25 }
 0x314   : > { %1162 = vmatprep.subr.mxu0 %v1251_v14 }
 0x315   : > { %1163 = vmatpush3.msra.mxu0 %v768_v26 }
 0x316   : > { %1164 = vmatprep.subr.mxu0 %v1251_v14 }
 0x317   : > { %1165 = vmatpush3.msra.mxu0 %v767_v27 }
 0x318   : > { %1166 = vmatprep.subr.mxu0 %v1251_v14 }
 0x319   : > { %1167 = vmatpush3.msra.mxu0 %v766_v28 }
 0x31a   : > { %1168 = vmatprep.subr.mxu0 %v1251_v14 }
 0x31b   : > { %1169 = vmatpush3.msra.mxu0 %v765_v29 }
 0x31c   : > { %1170 = vmatprep.subr.mxu0 %v1251_v14 }
 0x31d   : > { %1171 = vmatpush3.msra.mxu0 %v764_v30 }
 0x31e   : > { %1172 = vmatprep.subr.mxu0 %v1251_v14 }
 0x31f   : > { %1173 = vmatpush3.msra.mxu0 %v763_v31 }
 0x38a   : > { %v760_v33 = vpop.permute.xlu0 %759 }
 0x38b   : > { %v762_v34 = vmul.f32 %v760_v33, %v756_v32 }
 0x38d   : > { %1175 = vmatmul.mubr.f32.vlgmr.msra.gmra.mxu0 %v762_v34 }
 0x44d   : > { %v852_v36 = vpop.f32.mrf.mxu0 }
 0x44e   : > { %v853_v37 = vadd.f32 %v928_v35, %v852_v36 }
 0x44f   : > { %v1176_v38 = vpop.f32.mrf.mxu0 }
 0x450   : > { %vm856_vm7 = vcmp.ge.f32.partialorder %v853_v37, 0.0  ;;  %v857_v39 = vmul.f32 0.01, %v853_v37 }
 0x452   : > { %v858_v40 = vsel %vm856_vm7, %v853_v37, %v857_v39 }
 0x453   : > { %859 = vst [vmem:[#allocation6] sm:$0x3] %v858_v40 }
 0x454 PF: > { %p1181_p7 = scmp.eq.s32.totalorder %s1308_s30, 1  ;;  %s1253_s27 = smov [#allocation6]  }
 0x455   : > { %s867_s28 = sshll.u32 %s1253_s27, 4  ;;  %s868_s28 = int_to_ptr.vmem [resolvable:$true] %s867_s28 }
 0x456   : > { %s1209_s3 = scalar_lea.vmem %s868_s28, 32  ;;  %p1216_p11 = scmp.lt.s32.totalorder %s868_s28, %s868_s28 }
 0x457   : > { %p1210_p8 = scmp.ne.s32.totalorder %s868_s28, %s1209_s3  ;;  %p1217_p12 = scmp.lt.s32.totalorder %s1209_s3, %s1209_s3 }
 0x459   : > { %p1211_p9 = pnand %p1210_p8, %p1181_p7  ;;  %p1218_p13 = por %p1217_p12, %p1216_p11 }
 0x45b   : > { %p1212_p10 = pneg %p1211_p9 }
 0x45d   : > { %p1219_p0 = pnand %p1218_p13, %p1212_p10 }
 0x45f   : > { %1222 = shalt.err (!%p1219_p0)
}
 0x460   : > { %1178 = dma.vmem_to_hbm [thread:$0]  (%p1181_p7), %s868_s28, 32, %s1578_s8, [#allocation7]  }
 0x461   : > { %1238 = dma.done.wait (%p1181_p7), [#allocation7], 32  }
 0x462   : > { %1240 = vsyncadd (%p1181_p7), [#allocation7], 4294967264 }
 0x463 PF: > { %s21_s29 = sadd.s32 1, %s1243_s29  }
 0x464   : > { %p18_p1 = scmp.ge.s32.totalorder %s21_s29, 4  }
 0x466   :  { %20 = sbr.rel (!%p18_p1) target bundleno = 4 (0x4), region = 90 }
 0x46b   :  { %880 = vsyncpa [#allocation7], 1 }
 0x46c   :  { %882 = vsyncpa [#allocation7 + $0x1], 1 }

</bundles_post_ra>
